<compile_context>
chip_gen: v7x
topology: tpu7x:2x2x1
jax: 0.10.0
libtpu: 0.0.40
codegen_flags: <defaults>
</compile_context>

<pallas_src>
import functools

import jax
import jax.numpy as jnp
from jax import lax
from jax.experimental import pallas as pl
from jax.experimental.pallas import tpu as pltpu


def _round_up(x, m):
    return ((x + m - 1) // m) * m


def _cdiv(a, b):
    return -(-a // b)


_VMEM_BUDGET = 24 << 20   # target resident bytes (leaves headroom on v7x's 64 MiB)
_MAX_TILE = 2048          # node-tile upper bound


def _choose_tile(n, per_row_bytes, fixed_bytes, tile_nodes=None):
    """Pick the node-tile size from a VMEM inventory (multiples of 256 for the MXU)."""
    if n <= 256:
        return n                                  # single full-dim tile, no padding games
    if tile_nodes is not None:
        assert tile_nodes % 128 == 0, "tile_nodes must be a multiple of 128"
        return max(128, min(tile_nodes, (n // 128) * 128))
    avail = max(_VMEM_BUDGET - fixed_bytes, 4 << 20)
    cap = int(avail // max(per_row_bytes, 1))
    cap = max(256, min(_MAX_TILE, (cap // 256) * 256))
    return min(cap, (n // 256) * 256)


def _vmem_limit(per_row_bytes, tn, fixed_bytes):
    need = per_row_bytes * tn + fixed_bytes + (8 << 20)
    return int(min(50 << 20, max(16 << 20, need)))


# ---------------------------------------------------------------------------
# Kernels
# ---------------------------------------------------------------------------
def _node_readout_kernel(x_ref, w_ref, b_ref, out_ref):
    """Per-node linear layer on one node tile: logits = x @ W + b."""
    out_ref[...] = (
        jnp.dot(x_ref[...], w_ref[...], preferred_element_type=jnp.float32)
        + b_ref[...]
    ).astype(out_ref.dtype)


def _graph_pool_kernel(seg_ref, x_ref, pooled_ref, cnt_ref, *, pooling_type, n_valid):
    """Segment-pool one node tile into the resident (Gp, H) output block.

    seg_ref:    (1, TN) int32 for sum/mean  |  (TN, 1) int32 for max
    x_ref:      (TN, H)  node embeddings tile (H unpadded, full-dim block)
    pooled_ref: (Gp, H)  f32 resident output block (one per core-split index)
    cnt_ref:    (Gp, 1)  f32 per-graph node counts (used for mean only)
    """
    k = pl.program_id(1)
    tn, _ = x_ref.shape
    gp = pooled_ref.shape[0]

    @pl.when(k == 0)
    def _init():
        if pooling_type == "max":
            pooled_ref[...] = jnp.full(pooled_ref.shape, -jnp.inf, pooled_ref.dtype)
        else:
            pooled_ref[...] = jnp.zeros(pooled_ref.shape, pooled_ref.dtype)
        cnt_ref[...] = jnp.zeros(cnt_ref.shape, cnt_ref.dtype)

    # Global row offset of this tile.  The core-split axis (program_id(0)) can
    # produce duplicate / past-the-end tiles (their DMA index is clamped in the
    # index_map); the row-validity mask makes those contribute nothing.  It also
    # handles the partial last tile when TN does not divide N.
    row0 = (pl.program_id(0) * pl.num_programs(1) + k) * tn
    x = x_ref[...]
    valid_col = (lax.broadcasted_iota(jnp.int32, (tn, 1), 0) + row0) < n_valid

    if pooling_type in ("sum", "mean"):
        seg = seg_ref[...]                                            # (1, TN)
        valid_row = (lax.broadcasted_iota(jnp.int32, (1, tn), 1) + row0) < n_valid
        gid = lax.broadcasted_iota(jnp.int32, (gp, tn), 0)
        onehot = (seg == gid) & valid_row                             # (Gp, TN)
        # zero out garbage rows (OOB reads) so 0 * NaN can never reach the MXU
        x_m = jnp.where(valid_col, x, 0)
        pooled_ref[...] += jnp.dot(onehot.astype(x.dtype), x_m,
                                   preferred_element_type=jnp.float32)
        if pooling_type == "mean":
            cnt_ref[...] += jnp.sum(onehot.astype(jnp.float32), axis=1, keepdims=True)
    else:  # max: per-graph running max, peak live data is one (TN, H) f32 tile
        seg_col = seg_ref[...]                                        # (TN, 1)
        x32 = x.astype(jnp.float32)

        @pl.loop(0, gp)
        def _per_graph(g):
            sel = (seg_col == g) & valid_col                          # (TN, 1)
            m = jnp.max(jnp.where(sel, x32, -jnp.inf), axis=0, keepdims=True)  # (1, H)
            pooled_ref[pl.ds(g, 1), :] = jnp.maximum(pooled_ref[pl.ds(g, 1), :], m)


# ---------------------------------------------------------------------------
# Wrapper (layout plumbing: tiling, pallas_call, tiny combine in XLA)
# ---------------------------------------------------------------------------
def zero_cell_readout(x, batch_idx, weight, bias, *, task_level="graph",
                      pooling_type="sum", num_graphs=None, tile_nodes=None):
    """JAX/Pallas equivalent of AbstractZeroCellReadOut.compute_logits.

    x:          (N, H) node embeddings (model_out['x_0'])
    batch_idx:  (N,)   int graph assignment (batch['batch_0'])
    weight:     (C, H) torch.nn.Linear weight layout
    bias:       (C,)
    num_graphs: static int, required for task_level='graph'
    """
    assert task_level in ("graph", "node"), "Invalid task_level"
    assert pooling_type in ("max", "sum", "mean"), "Invalid pooling_type"

    n, h = x.shape
    c = weight.shape[0]
    dtype = x.dtype
    isz = dtype.itemsize
    hl = _round_up(h, 128)   # per-row VMEM lane footprint (layout, not HBM traffic)

    # ---- node-level readout ------------------------------------------------
    if task_level == "node":
        cp = _round_up(c, 128)   # lane-dense output channels (unmasked stores)
        w_t = jnp.pad(weight.T.astype(dtype), ((0, 0), (0, cp - c)))        # (H, Cp)
        b2d = jnp.pad(bias.astype(jnp.float32).reshape(1, c),
                      ((0, 0), (0, cp - c)))                                # (1, Cp)
        # VMEM inventory: x + out double buffers + f32 temp (per row); W/b (fixed)
        per_row = 2 * hl * isz + 2 * cp * isz + cp * 4
        fixed = 2 * _round_up(h, 8) * cp * isz + 2 * 8 * cp * 4
        tn = _choose_tile(n, per_row, fixed, tile_nodes)
        n_tiles = _cdiv(n, tn)
        # Note: for very large C on v5e one would additionally tile Cp; typical
        # readout C (num classes) fits a single block.
        out = pl.pallas_call(
            _node_readout_kernel,
            out_shape=jax.ShapeDtypeStruct((n_tiles * tn, cp), dtype),
            grid=(n_tiles,),
            in_specs=[
                pl.BlockSpec((tn, h), lambda i: (i, 0)),   # H unpadded: full-dim block
                pl.BlockSpec((h, cp), lambda i: (0, 0)),
                pl.BlockSpec((1, cp), lambda i: (0, 0)),
            ],
            out_specs=pl.BlockSpec((tn, cp), lambda i: (i, 0)),
            compiler_params=pltpu.CompilerParams(
                dimension_semantics=("parallel",),
                vmem_limit_bytes=_vmem_limit(per_row, tn, fixed)),
            cost_estimate=pl.CostEstimate(
                flops=int(2 * n * h * cp), transcendentals=0,
                bytes_accessed=int((n * h + h * cp + n * cp) * isz)),
        )(x, w_t, b2d)
        return out[:n, :c]

    # ---- graph-level readout -------------------------------------------------
    if num_graphs is None:
        raise ValueError(
            "num_graphs must be passed as a static int for task_level='graph' "
            "(avoids device->host sync and jit concretization errors).")
    g = int(num_graphs)
    gp = _round_up(g, 8)

    if pooling_type == "max":
        # column layout: mask aligns with x's row (sublane) axis, no transposes
        seg = batch_idx.astype(jnp.int32).reshape(n, 1)
        per_row = 2 * hl * isz + 8 * hl + 1024      # x dbuf + f32 temps + seg-col dbuf
    else:
        # row layout: one-hot (Gp, TN) @ x on the MXU
        seg = batch_idx.astype(jnp.int32).reshape(1, n)
        per_row = 2 * hl * isz + 8 * gp + 64        # x dbuf + one-hot temp + seg-row dbuf
    fixed = 4 * gp * hl * 4 + 4 * gp * 128 * 4 + (1 << 20)
    tn = _choose_tile(n, per_row, fixed, tile_nodes)
    n_tiles = _cdiv(n, tn)
    half = _cdiv(n_tiles, 2)        # 2-way split of the node stream across TensorCores
    n_last = n_tiles - 1

    def _tile_map(cc, kk):          # clamp: duplicate tiles are masked in-kernel
        return (jnp.minimum(cc * half + kk, n_last), 0)

    def _seg_row_map(cc, kk):
        return (0, jnp.minimum(cc * half + kk, n_last))

    seg_spec = (pl.BlockSpec((tn, 1), _tile_map) if pooling_type == "max"
                else pl.BlockSpec((1, tn), _seg_row_map))

    kernel = functools.partial(_graph_pool_kernel,
                               pooling_type=pooling_type, n_valid=n)
    pooled_parts, cnt_parts = pl.pallas_call(
        kernel,
        out_shape=(jax.ShapeDtypeStruct((2, gp, h), jnp.float32),
                   jax.ShapeDtypeStruct((2, gp, 1), jnp.float32)),
        grid=(2, half),
        in_specs=[seg_spec,
                  pl.BlockSpec((tn, h), _tile_map)],
        out_specs=(pl.BlockSpec((None, gp, h), lambda cc, kk: (cc, 0, 0)),
                   pl.BlockSpec((None, gp, 1), lambda cc, kk: (cc, 0, 0))),
        compiler_params=pltpu.CompilerParams(
            dimension_semantics=("parallel", "arbitrary"),
            vmem_limit_bytes=_vmem_limit(per_row, tn, fixed)),
        cost_estimate=pl.CostEstimate(
            flops=int(2 * n * h * gp), transcendentals=0,
            bytes_accessed=int(n * h * isz + n * 4 + 2 * gp * (h + 1) * 4)),
    )(seg, x)

    # Combine the two per-core partials and apply the linear (tiny, f32, in XLA).
    if pooling_type == "sum":
        pooled = pooled_parts[0] + pooled_parts[1]
    elif pooling_type == "mean":
        cnt = jnp.maximum(cnt_parts[0] + cnt_parts[1], 1.0)
        pooled = (pooled_parts[0] + pooled_parts[1]) / cnt
    else:
        pooled = jnp.maximum(pooled_parts[0], pooled_parts[1])
        # empty graphs -> 0 (matches torch_geometric scatter's fill for 'max')
        pooled = jnp.where(jnp.isneginf(pooled), 0.0, pooled)
    logits = pooled[:g] @ weight.T.astype(jnp.float32) + bias.astype(jnp.float32)
    return logits.astype(dtype)


# ---------------------------------------------------------------------------
# Pure-JAX reference (for correctness check)
# ---------------------------------------------------------------------------
def _reference(x, batch_idx, weight, bias, task_level, pooling_type, num_graphs):
    if task_level == "node":
        return x @ weight.T + bias
    if pooling_type == "sum":
        pooled = jax.ops.segment_sum(x, batch_idx, num_segments=num_graphs)
    elif pooling_type == "mean":
        s = jax.ops.segment_sum(x, batch_idx, num_segments=num_graphs)
        cnt = jax.ops.segment_sum(jnp.ones((x.shape[0],)), batch_idx,
                                  num_segments=num_graphs)
        pooled = s / jnp.maximum(cnt, 1.0)[:, None]
    else:
        pooled = jax.ops.segment_max(x, batch_idx, num_segments=num_graphs)
    return pooled @ weight.T + bias


# ---------------------------------------------------------------------------
if __name__ == "__main__":
    key = jax.random.PRNGKey(0)
    ok = True

    # Case A: tiny single-tile shapes (exercises full-dim blocks, G/C padding)
    # Case B: multi-tile node axis with an odd tile count (exercises the
    #         reduction loop, the 2-way core split + clamped duplicate tile,
    #         and the partial last tile / row-validity masking)
    cases = [
        dict(N=16, H=32, C=8, G=2, tile_nodes=None),
        dict(N=300, H=64, C=10, G=3, tile_nodes=128),
    ]

    for cfg in cases:
        N, H, C, G = cfg["N"], cfg["H"], cfg["C"], cfg["G"]
        key, k_x, k_w, k_b = jax.random.split(key, 4)

        x = jax.random.normal(k_x, (N, H), dtype=jnp.float32)
        weight = jax.random.normal(k_w, (C, H), dtype=jnp.float32) * 0.1
        bias = jax.random.normal(k_b, (C,), dtype=jnp.float32) * 0.1
        # contiguous graph assignment; every graph non-empty
        batch_idx = jnp.minimum(jnp.arange(N) * G // N, G - 1).astype(jnp.int32)

        # graph-level readout for every pooling type
        for pooling in ("sum", "mean", "max"):
            out = zero_cell_readout(
                x, batch_idx, weight, bias,
                task_level="graph", pooling_type=pooling,
                num_graphs=G, tile_nodes=cfg["tile_nodes"])
            jax.block_until_ready(out)
            ref = _reference(x, batch_idx, weight, bias, "graph", pooling, G)
            ok &= bool(jnp.allclose(out, ref, atol=1e-3, rtol=1e-3))

        # node-level readout (no pooling)
        out_node = zero_cell_readout(
            x, batch_idx, weight, bias,
            task_level="node", tile_nodes=cfg["tile_nodes"])
        jax.block_until_ready(out_node)
        ref_node = _reference(x, batch_idx, weight, bias, "node", "sum", G)
        ok &= bool(jnp.allclose(out_node, ref_node, atol=1e-3, rtol=1e-3))

    print("KERNEL_OK" if ok else "KERNEL_MISMATCH")
</pallas_src>

<mosaic_0001>
module attributes {stable_mosaic.version = 11 : i64} {
  func.func @_graph_pool_kernel(%arg0: i32, %arg1: i32, %arg2: memref<1x16xi32, #tpu.memory_space<vmem>>, %arg3: memref<16x32xf32, #tpu.memory_space<vmem>>, %arg4: memref<1x8x32xf32, #tpu.memory_space<vmem>>, %arg5: memref<1x8x1xf32, #tpu.memory_space<vmem>>) attributes {dimension_semantics = [#tpu.dimension_semantics<parallel>, #tpu.dimension_semantics<arbitrary>], iteration_bounds = array<i64: 2, 1>, scalar_prefetch = 0 : i64, scratch_operands = 0 : i64, tpu.core_type = #tpu.core_type<tc>, window_params = [{transform_indices = @transform_0, window_bounds = array<i64: 1, 16>}, {transform_indices = @transform_1, window_bounds = array<i64: 16, 32>}, {transform_indices = @transform_2, window_bounds = array<i64: 1, 8, 32>}, {transform_indices = @transform_3, window_bounds = array<i64: 1, 8, 1>}]} {
    %c0_i32 = arith.constant 0 : i32
    %0 = arith.cmpi eq, %arg1, %c0_i32 : i32
    %1 = arith.extui %0 : i1 to i32
    %c0_i32_0 = arith.constant 0 : i32
    %2 = arith.cmpi ne, %1, %c0_i32_0 : i32
    scf.if %2 {
      %cst_13 = arith.constant 0.000000e+00 : f32
      %37 = vector.broadcast %cst_13 : f32 to vector<8x32xf32>
      %c0_14 = arith.constant 0 : index
      %c0_15 = arith.constant 0 : index
      %c0_16 = arith.constant 0 : index
      %38 = vector.load %arg4[%c0_14, %c0_15, %c0_16] : memref<1x8x32xf32, #tpu.memory_space<vmem>>, vector<1x8x32xf32>
      %39 = vector.shape_cast %38 : vector<1x8x32xf32> to vector<8x32xf32>
      %40 = vector.shape_cast %37 : vector<8x32xf32> to vector<1x8x32xf32>
      tpu.vector_store %arg4[%c0_14, %c0_15, %c0_16], %40 {strides = array<i32>} : memref<1x8x32xf32, #tpu.memory_space<vmem>>, vector<1x8x32xf32>,
      %cst_17 = arith.constant 0.000000e+00 : f32
      %41 = vector.broadcast %cst_17 : f32 to vector<8x1xf32>
      %c0_18 = arith.constant 0 : index
      %c0_19 = arith.constant 0 : index
      %c0_20 = arith.constant 0 : index
      %42 = vector.load %arg5[%c0_18, %c0_19, %c0_20] : memref<1x8x1xf32, #tpu.memory_space<vmem>>, vector<1x8x1xf32>
      %43 = vector.shape_cast %42 : vector<1x8x1xf32> to vector<8x1xf32>
      %44 = vector.shape_cast %41 : vector<8x1xf32> to vector<1x8x1xf32>
      tpu.vector_store %arg5[%c0_18, %c0_19, %c0_20], %44 {strides = array<i32>} : memref<1x8x1xf32, #tpu.memory_space<vmem>>, vector<1x8x1xf32>,
    } else {
    }
    %c1_i32 = arith.constant 1 : i32
    %3 = arith.muli %arg0, %c1_i32 : i32
    %4 = arith.addi %3, %arg1 : i32
    %c16_i32 = arith.constant 16 : i32
    %5 = arith.muli %4, %c16_i32 : i32
    %c0 = arith.constant 0 : index
    %c0_1 = arith.constant 0 : index
    %6 = vector.load %arg3[%c0, %c0_1] : memref<16x32xf32, #tpu.memory_space<vmem>>, vector<16x32xf32>
    %7 = tpu.iota {dimensions = array<i32: 0>} : vector<16x1xi32>
    %8 = vector.broadcast %5 : i32 to vector<16x1xi32>
    %9 = arith.addi %7, %8 : vector<16x1xi32>
    %c16_i32_2 = arith.constant 16 : i32
    %10 = vector.broadcast %c16_i32_2 : i32 to vector<16x1xi32>
    %11 = arith.cmpi slt, %9, %10 : vector<16x1xi32>
    %c0_3 = arith.constant 0 : index
    %c0_4 = arith.constant 0 : index
    %12 = vector.load %arg2[%c0_3, %c0_4] : memref<1x16xi32, #tpu.memory_space<vmem>>, vector<1x16xi32>
    %13 = tpu.iota {dimensions = array<i32: 1>} : vector<1x16xi32>
    %14 = vector.broadcast %5 : i32 to vector<1x16xi32>
    %15 = arith.addi %13, %14 : vector<1x16xi32>
    %c16_i32_5 = arith.constant 16 : i32
    %16 = vector.broadcast %c16_i32_5 : i32 to vector<1x16xi32>
    %17 = arith.cmpi slt, %15, %16 : vector<1x16xi32>
    %18 = tpu.iota {dimensions = array<i32: 0>} : vector<8x16xi32>
    %19 = vector.broadcast %12 : vector<1x16xi32> to vector<8x16xi32>
    %20 = arith.cmpi eq, %19, %18 : vector<8x16xi32>
    %21 = vector.broadcast %17 : vector<1x16xi1> to vector<8x16xi1>
    %22 = arith.andi %20, %21 : vector<8x16xi1>
    %c0_i32_6 = arith.constant 0 : i32
    %23 = arith.sitofp %c0_i32_6 : i32 to f32
    %24 = vector.shape_cast %11 : vector<16x1xi1> to vector<16x1xi1>
    %25 = vector.broadcast %24 : vector<16x1xi1> to vector<16x32xi1>
    %26 = vector.broadcast %23 : f32 to vector<16x32xf32>
    %27 = arith.select %25, %6, %26 : vector<16x32xi1>, vector<16x32xf32>
    %c0_7 = arith.constant 0 : index
    %c0_8 = arith.constant 0 : index
    %c0_9 = arith.constant 0 : index
    %28 = vector.load %arg4[%c0_7, %c0_8, %c0_9] : memref<1x8x32xf32, #tpu.memory_space<vmem>>, vector<1x8x32xf32>
    %29 = vector.shape_cast %28 : vector<1x8x32xf32> to vector<8x32xf32>
    %30 = arith.extui %22 : vector<8x16xi1> to vector<8x16xi32>
    %31 = arith.sitofp %30 : vector<8x16xi32> to vector<8x16xf32>
    %cst = arith.constant dense<0.000000e+00> : vector<8x32xf32>
    %32 = tpu.matmul %31, %27, %cst {dimension_numbers = #tpu.dot_dimension_numbers<[1], [0], [0], [1], [0, 0, 1, 1], [], []>} : vector<8x16xf32>, vector<16x32xf32>, vector<8x32xf32> -> vector<8x32xf32>
    %33 = arith.addf %29, %32 : vector<8x32xf32>
    %c0_10 = arith.constant 0 : index
    %c0_11 = arith.constant 0 : index
    %c0_12 = arith.constant 0 : index
    %34 = vector.load %arg4[%c0_10, %c0_11, %c0_12] : memref<1x8x32xf32, #tpu.memory_space<vmem>>, vector<1x8x32xf32>
    %35 = vector.shape_cast %34 : vector<1x8x32xf32> to vector<8x32xf32>
    %36 = vector.shape_cast %33 : vector<8x32xf32> to vector<1x8x32xf32>
    tpu.vector_store %arg4[%c0_10, %c0_11, %c0_12], %36 {strides = array<i32>} : memref<1x8x32xf32, #tpu.memory_space<vmem>>, vector<1x8x32xf32>,
    return
  }
  func.func @transform_0(%arg0: i32, %arg1: i32) -> (i32, i32) {
    %c1_i32 = arith.constant 1 : i32
    %0 = arith.muli %arg0, %c1_i32 : i32
    %1 = arith.addi %0, %arg1 : i32
    %c0_i32 = arith.constant 0 : i32
    %2 = arith.minsi %1, %c0_i32 : i32
    %c0_i32_0 = arith.constant 0 : i32
    %c0_i32_1 = arith.constant 0 : i32
    return %c0_i32_0, %2 : i32, i32
  }
  func.func @transform_1(%arg0: i32, %arg1: i32) -> (i32, i32) {
    %c1_i32 = arith.constant 1 : i32
    %0 = arith.muli %arg0, %c1_i32 : i32
    %1 = arith.addi %0, %arg1 : i32
    %c0_i32 = arith.constant 0 : i32
    %2 = arith.minsi %1, %c0_i32 : i32
    %c0_i32_0 = arith.constant 0 : i32
    %c0_i32_1 = arith.constant 0 : i32
    return %2, %c0_i32_0 : i32, i32
  }
  func.func @transform_2(%arg0: i32, %arg1: i32) -> (i32, i32, i32) {
    %c0_i32 = arith.constant 0 : i32
    %c0_i32_0 = arith.constant 0 : i32
    %c0_i32_1 = arith.constant 0 : i32
    return %arg0, %c0_i32, %c0_i32_0 : i32, i32, i32
  }
  func.func @transform_3(%arg0: i32, %arg1: i32) -> (i32, i32, i32) {
    %c0_i32 = arith.constant 0 : i32
    %c0_i32_0 = arith.constant 0 : i32
    %c0_i32_1 = arith.constant 0 : i32
    return %arg0, %c0_i32, %c0_i32_0 : i32, i32, i32
  }
}

</mosaic_0001>

<bundles_post_ra>
// kernel: tpu_custom_call.1
= control target key start
LH: loop header
LB: loop body
LE: loop exit
PB: predicated region body
PF: predicated region fallthrough
CT: control target
= control target key end

     0   :  { %9 = vsyncpa [#allocation3], 0  ;;  %s1084_s0 = inlined_call_operand.hbm [shape: s32[1,16], index: 0, kind: input, shape index: {}]   ;;  %s1085_s1 = inlined_call_operand.hbm [shape: f32[16,32], index: 1, kind: input, shape index: {}]   ;;  %s1086_s2 = inlined_call_operand.hbm [shape: f32[2,8,32], index: 2, kind: output, shape index: {0}]   ;;  %s1087_s3 = inlined_call_operand.vmem [shape: f32[2,8,1], index: 3, kind: output, shape index: {1}]  }
   0x1   :  { %11 = vsyncpa [#allocation3 + $0x1], 0 }
   0x2   :  { %12 = vsyncpa [#allocation6], 0 }
   0x3   :  { %14 = vsyncpa [#allocation6 + $0x1], 0 }
   0x4   :  { %15 = vsyncpa [#allocation4], 0 }
   0x5   :  { %17 = vsyncpa [#allocation4 + $0x1], 0  ;;  %s863_s12 = smov 0   ;;  %s865_s13 = smov 0  }
   0x6   :  { %s867_s14 = smov 0   ;;  %s869_s15 = smov 0  }
   0x7   :  { %s871_s16 = smov 0   ;;  %s873_s17 = smov 0  }
   0x8   :  { %s875_s18 = smov 0   ;;  %s877_s19 = smov 0  }
   0x9 LB: > { %s533_s20 = sadd.s32 4294967295, %s833_s19   ;;  %s534_s21 = sadd.s32 4294967294, %s833_s19   ;;  %s833_s19 = sphi %s877_s19, %s23_s19   ;;  %s829_s18 = sphi %s875_s18, %s1108_s18   ;;  %s825_s17 = sphi %s873_s17, %s1107_s17   ;;  %s821_s16 = sphi %s871_s16, %s1074_s16   ;;  %s817_s15 = sphi %s869_s15, %s1106_s15   ;;  %s813_s14 = sphi %s867_s14, %s1105_s14   ;;  %s809_s13 = sphi %s865_s13, %s1104_s13   ;;  %s805_s12 = sphi %s863_s12, %s1103_s12  }
   0xa   : > { %s35_s22 = sadd.s32 1, %s829_s18  ;;  %p802_p1 = scmp.ne.s32.totalorder %s821_s16, 0 }
   0xb   : > { %p37_p0 = scmp.ge.s32.totalorder %s35_s22, 2  ;;  %p56_p2 = scmp.eq.s32.totalorder %s833_s19, 0 }
   0xc   : > { %p61_p3 = scmp.ne.s32.totalorder %s821_s16, %s817_s15  ;;  %p62_p5 = scmp.eq.s32.totalorder %s533_s20, 0 }
   0xd   : > { %s1110_s22 = smov (%p37_p0, %s35_s22), 0  ;;  %p909_p4 = por %p802_p1, %p56_p2 }
   0xe   : > { %p913_p6 = por %p62_p5, %p61_p3  ;;  %s103_s25 = ssub.s32 %s829_s18, %s1110_s22 }
   0xf   : > { %p104_p7 = scmp.eq.s32.totalorder %s103_s25, 0  ;;  %s106_s26 = sadd.s32 1, %s813_s14 }
  0x10   : > { %s1091_s24 = scalar_select %p913_p6, 1, 0 }
  0x11   : > { %s921_s27 = scalar_select %p104_p7, %s813_s14, %s106_s26  }
  0x12   : > { %p116_p8 = scmp.ne.s32.totalorder %s813_s14, %s809_s13  ;;  %p117_p9 = scmp.eq.s32.totalorder %s533_s20, 1 }
  0x13   : > { %p122_p10 = scmp.ne.s32.totalorder %s809_s13, %s805_s12  ;;  %p123_p11 = scmp.eq.s32.totalorder %s534_s21, 1 }
  0x14   : > { %p927_p12 = por %p117_p9, %p116_p8  ;;  %p587_p1 = scmp.lt.s32.totalorder %s833_s19, 2 }
  0x15   : > { %p932_p0 = por %p123_p11, %p122_p10  ;;  %s835_s30 = smov [#allocation2]  }
  0x16   : > { %s1092_s28 = scalar_select %p927_p12, 1, 0 }
  0x17   : > { %s1093_s29 = scalar_select %p932_p0, 1, 0 }
  0x18   : > { %s182_s4 = sshll.u32 %s835_s30, 4  ;;  %p939_p2 = pnand %p587_p1, %p909_p4  ;;  %s183_s4 = int_to_ptr.vmem [resolvable:$true] %s182_s4 }
  0x19   : > { %s666_s8 = scalar_lea.hbm %s1084_s0, 16 }
  0x1a   : > { %p667_p7 = scmp.ne.s32.totalorder %s1084_s0, %s666_s8  ;;  %p668_p8 = pneg %p939_p2 }
  0x1b   : > { %p673_p10 = scmp.lt.u32.totalorder %s666_s8, %s666_s8  ;;  %p675_p11 = scmp.lt.u32.totalorder %s666_s8, %s1084_s0 }
  0x1c   : > { %p669_p4 = pnand %p668_p8, %p667_p7 }
  0x1d   : > { %p676_p1 = por %p675_p11, %p673_p10 }
  0x1e   : > { %p670_p9 = pneg %p669_p4 }
  0x20   : > { %p677_p13 = pnand %p676_p1, %p670_p9 }
  0x22   : > { %680 = shalt.err (!%p677_p13)
}
  0x23   : > { %s681_s20 = scalar_lea.vmem %s183_s4, 16  ;;  %s688_s21 = scalar_lea.vmem %s183_s4, 32 }
  0x24   : > { %p682_p3 = scmp.ne.s32.totalorder %s183_s4, %s681_s20  ;;  %p689_p12 = scmp.lt.s32.totalorder %s183_s4, %s183_s4 }
  0x25   : > { %p690_p6 = scmp.lt.s32.totalorder %s688_s21, %s681_s20 }
  0x26   : > { %p684_p5 = pnand %p682_p3, %p668_p8 }
  0x27   : > { %p691_p7 = por %p690_p6, %p689_p12 }
  0x28   : > { %p685_p0 = pneg %p684_p5 }
  0x2a   : > { %p692_p4 = pnand %p691_p7, %p685_p0 }
  0x2c   : > { %695 = shalt.err (!%p692_p4)
}
  0x2d   : > { %579 = dma.hbm_to_vmem [thread:$0]  (!%p939_p2), %s1084_s0, 16, %s183_s4, [#allocation3]  }
  0x2e   : > { %p1095_p13 = scmp.lt.s32.totalorder %s833_s19, 3  ;;  %p1096_p9 = scmp.ge.s32.totalorder %s833_s19, 1 }
  0x2f   : > { %s836_s30 = smov [#allocation5]   ;;  %s696_s9 = scalar_lea.hbm %s1085_s1, 256 }
  0x30   : > { %p971_p10 = pnand %p1096_p9, %p1095_p13  ;;  %s203_s6 = sshll.u32 %s836_s30, 4  ;;  %s204_s6 = int_to_ptr.vmem [resolvable:$true] %s203_s6 }
  0x31   : > { %p697_p6 = scmp.ne.s32.totalorder %s1085_s1, %s696_s9  ;;  %p703_p3 = scmp.lt.u32.totalorder %s696_s9, %s696_s9 }
  0x32   : > { %s1097_s26 = scalar_select %p971_p10, 1, 0 }
  0x33   : > { %p699_p12 = pnand %p697_p6, %p668_p8  ;;  %p705_p5 = scmp.lt.u32.totalorder %s696_s9, %s1085_s1 }
  0x35   : > { %p700_p0 = pneg %p699_p12  ;;  %p706_p11 = por %p705_p5, %p703_p3 }
  0x37   : > { %p707_p1 = pnand %p706_p11, %p700_p0 }
  0x39   : > { %710 = shalt.err (!%p707_p1)
}
  0x3a   : > { %s711_s20 = scalar_lea.vmem %s204_s6, 256  ;;  %s718_s21 = scalar_lea.vmem %s204_s6, 512 }
  0x3b   : > { %p712_p7 = scmp.ne.s32.totalorder %s204_s6, %s711_s20  ;;  %p719_p9 = scmp.lt.s32.totalorder %s204_s6, %s204_s6 }
  0x3c   : > { %p720_p10 = scmp.lt.s32.totalorder %s718_s21, %s711_s20 }
  0x3d   : > { %p714_p4 = pnand %p712_p7, %p668_p8 }
  0x3e   : > { %p721_p6 = por %p720_p10, %p719_p9 }
  0x3f   : > { %p715_p13 = pneg %p714_p4 }
  0x41   : > { %p722_p12 = pnand %p721_p6, %p715_p13 }
  0x43   : > { %725 = shalt.err (!%p722_p12)
}
  0x44   : > { %s837_s23 = smov 128   ;;  %s838_s25 = smov 8  }
  0x45   : > { %582 = dma.hbm_to_vmem [thread:$0]  (!%p939_p2), %s1085_s1, 256, %s204_s6, [#allocation6], %s837_s23, %s837_s23, %s838_s25  }
  0x46   : > { %p1098_p0 = scmp.ne.s32.totalorder %s1097_s26, 0 }
  0x47   : > { %s998_s8 = sand.u32 (!%p1098_p0), 1, %s821_s16   ;;  %p1099_p8 = scmp.ne.s32.totalorder (!%p1098_p0), %s1091_s24, 0 }
  0x48   : > { %215 = sbr.rel (%p1098_p0) target bundleno = 324 (0x144), region = 28  ;;  %s218_s9 = scalar_lea.sflag (!%p1098_p0), [#allocation3], %s998_s8 }
  0x49   : > { %s220_s10 = scalar_lea.vmem (!%p1098_p0), [#allocation2], %s998_s8 }
  0x4f   : > { %791 = dma.done.wait (%p1099_p8), %s218_s9, 16  }
  0x50   : > { %793 = vsyncadd (%p1099_p8), %s218_s9, 4294967280  ;;  %s542_s5 = sshll.u32 %s998_s8, 4  ;;  %s226_s6 = scalar_lea.sflag [#allocation6], %s998_s8 }
  0x51   : > { %s229_s26 = scalar_lea.vmem [#allocation5], %s542_s5 }
  0x52   : > { %795 = dma.done.wait (%p1099_p8), %s226_s6, 256  }
  0x53   : > { %797 = vsyncadd (%p1099_p8), %s226_s6, 4294967040  ;;  %s545_s11 = sshll.u32 %s825_s17, 4  ;;  %v283_v0 = vlaneseq  ;;  %p267_p2 = scmp.lt.s32.totalorder %s825_s17, 1  ;;  %v839_v1 = vmov 0.0|0.0   ;;  %vm840_vm0 = vmmov 0   ;;  %v841_v4 = vmov 0.0  }
  0x54   : > { %566 = vmatprep.subr.bf16.mxu0 %v839_v1  ;;  %v286_v2 = vstv %s545_s11  ;;  %s251_s4 = sand.u32 1, %s809_s13   ;;  %563 = vmatprep.mubr.msk.f32.mxu0 %vm840_vm0, %v841_v4  ;;  %vm275_vm1 = vcmask 261120   ;;  %vm277_vm2 = vcmask 7168   ;;  %v281_v10 = vld [vmem:[%s229_s26] sm:$0xff]  ;;  %v282_v11 = vld [vmem:[%s229_s26 + $0x8] sm:$0xff]  ;;  %vm313_vm9 = vcmask 130048  }
  0x55   : > { %v284_v3 = vshrl.u32 %v283_v0, 7  ;;  %s268_s15 = scalar_select %p267_p2, %s825_s17, 1  ;;  %v293_v5 = vand.u32 127, %v283_v0  ;;  %v546_v12 = vld [vmem:[%s220_s10] ss:$0 sm:$0xff]  ;;  %v567_v13 = vpack.c.bf16 %v282_v11, %v281_v10 }
  0x56   : > { %s543_s24 = sshll.u32 %s251_s4, 3  ;;  %s552_s7 = sshll.u32 %s825_s17, 7 }
  0x57   : > { %v285_v6 = vadd.s32 8, %v284_v3  ;;  %v287_v7 = vadd.s32 %v286_v2, %v284_v3  ;;  %s544_s20 = sshll.u32 %s268_s15, 3  ;;  %v294_v8 = vadd.s32 %v293_v5, %v286_v2  ;;  %s253_s30 = scalar_lea.vmem [#allocation7], %s543_s24  ;;  %vm300_vm6 = vcmp.eq.s32.totalorder %v546_v12, %v284_v3 }
  0x58   : > { %s270_s25 = scalar_lea.vmem %s1087_s3, %s544_s20  ;;  %276 = vst.msk [vmem:[%s253_s30] sm:$0xff] %vm275_vm1, %v841_v4  ;;  %s408_s9 = sshll.u32 %s253_s30, 4  ;;  %s1030_s9 = int_to_ptr.vmem [resolvable:$true] %s408_s9 }
  0x59   : > { %v288_v9 = vadd.s32 %v286_v2, %v285_v6  ;;  %vm289_vm3 = vcmp.lt.s32.totalorder %v287_v7, 16  ;;  %278 = vst.msk [vmem:[%s270_s25] sm:$0xff] %vm277_vm2, %v841_v4  ;;  %vm295_vm4 = vcmp.lt.s32.totalorder %v294_v8, 16  ;;  %s1028_s5 = scalar_lea.hbm %s1086_s2, %s552_s7  ;;  %s391_s6 = scalar_lea.sflag [#allocation4], %s251_s4 }
  0x5a   : > { %vm303_vm8 = vmand %vm300_vm6, %vm295_vm4  ;;  %s726_s26 = scalar_lea.vmem %s1030_s9, 128  ;;  %p1100_p3 = scmp.ne.s32.totalorder %s1092_s28, 0 }
  0x5b   : > { %vm290_vm5 = vcmp.lt.s32.totalorder %v288_v9, 16  ;;  %v547_v14 = vsel %vm303_vm8, 1.0, %v841_v4  ;;  %p727_p10 = scmp.ne.s32.totalorder %s1030_s9, %s726_s26  ;;  %s842_s17 = smov [#allocation7]  }
  0x5c   : > { %vm568_vm7 = vmpackc.low %vm290_vm5, %vm289_vm3  ;;  %s730_s11 = sshll.u32 %s842_s17, 4  ;;  %s731_s11 = int_to_ptr.vmem [resolvable:$false] %s730_s11 }
  0x5d   : > { %569 = vmatpush3.bf16.msk.msra.mxu0 %vm568_vm7, %v567_v13  ;;  %p728_p5 = pnand %p727_p10, %p1100_p3  ;;  %s732_s15 = scalar_lea.vmem %s731_s11, 256 }
  0x5e   : > { %p733_p1 = scmp.lt.s32.totalorder %s1030_s9, %s731_s11  ;;  %p734_p7 = scmp.lt.s32.totalorder %s732_s15, %s726_s26 }
  0x5f   : > { %v310_v15 = vld [vmem:[%s253_s30] sm:$0xff]  ;;  %p729_p11 = pneg %p728_p5 }
  0x60   : > { %564 = vmatmul.mubr.msk.f32.vlgmr.msra.gmra.mrb[0].mxu0 %vm313_vm9, %v547_v14  ;;  %p735_p4 = por %p734_p7, %p733_p1 }
  0x62   : > { %p736_p13 = pnand %p735_p4, %p729_p11 }
 0x133   : > { %v383_v16 = vpop.f32.mrb[0].mxu0 }
 0x134   : > { %v387_v17 = vadd.f32 %v383_v16, %v310_v15  ;;  %v565_v18 = vpop.f32.mrb[1].mxu0 }
 0x136   : > { %389 = vst.msk [vmem:[%s253_s30] sm:$0xff] %vm275_vm1, %v387_v17 }
 0x137   : > { %739 = shalt.err (!%p736_p13)
}
 0x138   : > { %s740_s4 = scalar_lea.hbm %s1028_s5, 128  ;;  %s744_s21 = scalar_lea.hbm %s1086_s2, 256 }
 0x139   : > { %p741_p9 = scmp.ne.s32.totalorder %s1028_s5, %s740_s4  ;;  %p745_p0 = scmp.lt.u32.totalorder %s1028_s5, %s1086_s2 }
 0x13a   : > { %p746_p8 = scmp.lt.u32.totalorder %s744_s21, %s740_s4  ;;  %p748_p10 = scmp.lt.u32.totalorder %s740_s4, %s1028_s5 }
 0x13b   : > { %p742_p6 = pnand %p741_p9, %p1100_p3 }
 0x13c   : > { %p747_p2 = por %p746_p8, %p745_p0 }
 0x13d   : > { %p743_p12 = pneg %p742_p6 }
 0x13e   : > { %p749_p5 = por %p748_p10, %p747_p2 }
 0x140   : > { %p750_p11 = pnand %p749_p5, %p743_p12 }
 0x142   : > { %753 = shalt.err (!%p750_p11)
}
 0x143   : > { %574 = dma.vmem_to_hbm [thread:$0]  (%p1100_p3), %s1030_s9, 128, %s1028_s5, %s391_s6  }
 0x144 PF: > { %s423_s30 = sand.u32 1, %s805_s12   ;;  %p1101_p1 = scmp.ne.s32.totalorder %s1093_s29, 0 }
 0x145   : > { %p1102_p7 = scmp.ge.s32.totalorder %s833_s19, 2  ;;  %s424_s7 = scalar_lea.sflag [#allocation4], %s423_s30 }
 0x147   : > { %p584_p4 = pnand %p1102_p7, %p1101_p1 }
 0x149   : > { %799 = dma.done.wait (!%p584_p4), %s424_s7, 128  }
 0x14a   : > { %801 = vsyncadd (!%p584_p4), %s424_s7, 4294967168  ;;  %s23_s19 = sadd.s32 1, %s833_s19   ;;  %s1103_s12 = smov %s809_s13 }
 0x14b   : > { %p20_p13 = scmp.ge.s32.totalorder %s23_s19, 4   ;;  %s1104_s13 = smov %s813_s14 }
 0x14c   : > { %s1105_s14 = smov %s921_s27  ;;  %s1106_s15 = smov %s821_s16 }
 0x14d   : > { %s1074_s16 = smov 0   ;;  %s1107_s17 = smov %s829_s18 }
 0x14e   : > { %s1108_s18 = smov %s1110_s22  ;;  %22 = sbr.rel (!%p20_p13) target bundleno = 9 (0x9), region = 102 }
 0x155   :  { %436 = vsyncpa [#allocation3], 1 }
 0x156   :  { %438 = vsyncpa [#allocation3 + $0x1], 1 }
 0x157   :  { %439 = vsyncpa [#allocation6], 1 }
 0x158   :  { %441 = vsyncpa [#allocation6 + $0x1], 1 }
 0x159   :  { %442 = vsyncpa [#allocation4], 1 }
 0x15a   :  { %444 = vsyncpa [#allocation4 + $0x1], 1 }

</bundles_post_ra>
